<compile_context>
chip_gen: v6e
topology: v6e:2x2x1
jax: 0.10.0
libtpu: 0.0.40
codegen_flags: <defaults>
</compile_context>

<pallas_src>
import jax
import jax.numpy as jnp
from jax.experimental import pallas as pl
from jax.experimental.pallas import tpu as pltpu


def gcn_kernel(r_row_ref, r_col_ref, a_ref, x_ref,
               w1_ref, b1_ref, wf_ref, bf_ref,
               emb_ref, out_ref, h_acc):
    """One (row-block i, reduction-block k) step of the fused GCN forward."""
    k = pl.program_id(1)

    @pl.when(k == 0)
    def _():
        h_acc[...] = jnp.zeros_like(h_acc)

    # Column factor of diag(r) @ A @ diag(r): scale this K-block of x rows by r,
    # then contract with the raw bf16 adjacency tile on the MXU (f32 accumulate).
    xs = (r_col_ref[...] * x_ref[...]).astype(jnp.bfloat16)          # (TK, in)
    h_acc[...] += jnp.dot(a_ref[...], xs,
                          preferred_element_type=jnp.float32)        # (TM, in)

    @pl.when(k == pl.num_programs(1) - 1)
    def _():
        # Row factor of the normalization, then the two projections.
        # (in_features <= out_features here, so (A_t @ x) @ W1^T is the cheaper
        #  association; flip to A_t @ (x @ W1^T) when in_features > out_features.)
        h = (r_row_ref[...] * h_acc[...]).astype(jnp.bfloat16)       # (TM, in)
        z = jnp.dot(h, w1_ref[...], preferred_element_type=jnp.float32)
        z = jnp.maximum(z + b1_ref[...], 0.0)                        # (TM, out_pad)
        emb_ref[...] = z.astype(emb_ref.dtype)
        logits = jnp.dot(z.astype(jnp.bfloat16), wf_ref[...],
                         preferred_element_type=jnp.float32) + bf_ref[...]
        out_ref[...] = logits.astype(out_ref.dtype)


def _round_up(v, mult):
    return ((v + mult - 1) // mult) * mult


def _pick_tile(m, cap=512):
    for t in (512, 256, 128):
        if t <= cap and m % t == 0:
            return t
    return m   # small m: single full block (m must be a multiple of 8)


def gcn_forward(x, A, w1_t, b1, wf_t, bf, *, tm=None, tk=None):
    """x:(m,in), A:(m,m), w1_t:(in,out)=W1^T, b1:(1,out), wf_t:(out,cls)=FL^T, bf:(1,cls)."""
    m, in_features = x.shape
    out_features = w1_t.shape[1]
    n_classes = wf_t.shape[1]

    tm = tm if tm is not None else _pick_tile(m)
    tk = tk if tk is not None else _pick_tile(m)
    assert m % tm == 0 and m % tk == 0 and m % 8 == 0, "m must tile cleanly"

    # Degree normalization, hoisted out of the kernel (the full-column reduction
    # over A cannot be done per row-block once A is tiled).
    # NOTE: matches torch.rsqrt(A.sum(0)); isolated nodes (deg==0) give inf just
    # like the PyTorch module -- clamp here if production graphs need it.
    r = jax.lax.rsqrt(jnp.sum(A, axis=0, dtype=jnp.float32)).reshape(m, 1)

    # Zero-pad the projection lane dims to multiples of 128 -> lane-dense stores.
    out_pad = _round_up(out_features, 128)
    cls_pad = _round_up(n_classes, 128)
    w1_p = jnp.zeros((in_features, out_pad), jnp.bfloat16)
    w1_p = w1_p.at[:, :out_features].set(w1_t.astype(jnp.bfloat16))
    b1_p = jnp.zeros((1, out_pad), jnp.float32).at[:, :out_features].set(b1)
    wf_p = jnp.zeros((out_pad, cls_pad), jnp.bfloat16)
    wf_p = wf_p.at[:out_features, :n_classes].set(wf_t.astype(jnp.bfloat16))
    bf_p = jnp.zeros((1, cls_pad), jnp.float32).at[:, :n_classes].set(bf)

    # bf16 adjacency: exact for small-integer entries, halves HBM traffic for the
    # dominant O(m^2) operand, full MXU rate on v5e/v6e/v7x (no int path needed).
    a_lp = A.astype(jnp.bfloat16)

    grid = (m // tm, m // tk)

    emb_p, logits_p = pl.pallas_call(
        gcn_kernel,
        out_shape=(
            jax.ShapeDtypeStruct((m, out_pad), jnp.float32),
            jax.ShapeDtypeStruct((m, cls_pad), jnp.float32),
        ),
        grid_spec=pltpu.PrefetchScalarGridSpec(
            num_scalar_prefetch=0,
            grid=grid,
            in_specs=[
                pl.BlockSpec((tm, 1), lambda i, k: (i, 0)),                 # r row factor
                pl.BlockSpec((tk, 1), lambda i, k: (k, 0)),                 # r col factor
                pl.BlockSpec((tm, tk), lambda i, k: (i, k)),                # A tile
                pl.BlockSpec((tk, in_features), lambda i, k: (k, 0)),       # x K-block
                pl.BlockSpec((in_features, out_pad), lambda i, k: (0, 0)),  # W1^T (padded)
                pl.BlockSpec((1, out_pad), lambda i, k: (0, 0)),            # b1   (padded)
                pl.BlockSpec((out_pad, cls_pad), lambda i, k: (0, 0)),      # FL^T (padded)
                pl.BlockSpec((1, cls_pad), lambda i, k: (0, 0)),            # bF   (padded)
            ],
            out_specs=(
                pl.BlockSpec((tm, out_pad), lambda i, k: (i, 0)),
                pl.BlockSpec((tm, cls_pad), lambda i, k: (i, 0)),
            ),
            scratch_shapes=[pltpu.VMEM((tm, in_features), jnp.float32)],
        ),
        compiler_params=pltpu.CompilerParams(
            # Row-blocks shard across TensorCores (v7x megacore); K is a reduction.
            dimension_semantics=("parallel", "arbitrary"),
            # Generous but v7x-safe (64 MiB physical) scoped-VMEM budget; resident
            # footprint at <=512-wide tiles is far below this.
            vmem_limit_bytes=48 * 1024 * 1024,
        ),
    )(r, r, a_lp, x, w1_p, b1_p, wf_p, bf_p)

    return emb_p[:, :out_features], logits_p[:, :n_classes]


def _init_linear(key, fan_in, fan_out):
    # Deterministic init mimicking nn.Linear (uniform in +-1/sqrt(fan_in));
    # weights are stored transposed: (fan_in, fan_out) == W^T.
    kw, kb = jax.random.split(key)
    bound = 1.0 / jnp.sqrt(jnp.float32(fan_in))
    w = jax.random.uniform(kw, (fan_in, fan_out), jnp.float32, -bound, bound)
    b = jax.random.uniform(kb, (1, fan_out), jnp.float32, -bound, bound)
    return w, b


if __name__ == "__main__":
    # Small but tiling-exercising shapes: grid = (2 row blocks, 2 K blocks).
    m = 256
    in_features = 64
    out_features = 64
    n_classes = 10
    # TODO(synk): num_layers=2 variant (second W2 block) not wired up; num_layers=1.

    key = jax.random.PRNGKey(0)
    kx, ka, k1, k2 = jax.random.split(key, 4)

    x = jax.random.normal(kx, (m, in_features), jnp.float32)
    # Random symmetric adjacency with self-loops (so every degree > 0).
    A_raw = (jax.random.uniform(ka, (m, m)) > 0.9).astype(jnp.float32)
    A = jnp.clip(A_raw + A_raw.T, 0.0, 1.0) + jnp.eye(m, dtype=jnp.float32)

    w1_t, b1 = _init_linear(k1, in_features, out_features)   # W1 stored transposed
    wf_t, bf = _init_linear(k2, out_features, n_classes)     # FL stored transposed

    emb, logits = gcn_forward(x, A, w1_t, b1, wf_t, bf, tm=128, tk=128)
    jax.block_until_ready((emb, logits))

    # Pure-JAX reference with matching precision (bf16 MXU inputs, f32 accumulate).
    r = jax.lax.rsqrt(A.sum(axis=0))[:, None]
    xs = (r * x).astype(jnp.bfloat16)
    h = r * jnp.dot(A.astype(jnp.bfloat16), xs, preferred_element_type=jnp.float32)
    emb_ref = jnp.maximum(
        jnp.dot(h.astype(jnp.bfloat16), w1_t.astype(jnp.bfloat16),
                preferred_element_type=jnp.float32) + b1, 0.0)
    logits_ref = jnp.dot(emb_ref.astype(jnp.bfloat16), wf_t.astype(jnp.bfloat16),
                         preferred_element_type=jnp.float32) + bf
    assert jnp.allclose(emb, emb_ref, atol=1e-2, rtol=1e-2), "emb mismatch"
    assert jnp.allclose(logits, logits_ref, atol=1e-2, rtol=1e-2), "logits mismatch"

    print("KERNEL_OK")
</pallas_src>

<mosaic_0001>
module attributes {stable_mosaic.version = 11 : i64} {
  func.func @gcn_kernel(%arg0: i32, %arg1: i32, %arg2: memref<128x1xf32, #tpu.memory_space<vmem>>, %arg3: memref<128x1xf32, #tpu.memory_space<vmem>>, %arg4: memref<128x128xbf16, #tpu.memory_space<vmem>>, %arg5: memref<128x64xf32, #tpu.memory_space<vmem>>, %arg6: memref<64x128xbf16, #tpu.memory_space<vmem>>, %arg7: memref<1x128xf32, #tpu.memory_space<vmem>>, %arg8: memref<128x128xbf16, #tpu.memory_space<vmem>>, %arg9: memref<1x128xf32, #tpu.memory_space<vmem>>, %arg10: memref<128x128xf32, #tpu.memory_space<vmem>>, %arg11: memref<128x128xf32, #tpu.memory_space<vmem>>, %arg12: memref<128x64xf32, #tpu.memory_space<vmem>>) attributes {dimension_semantics = [#tpu.dimension_semantics<parallel>, #tpu.dimension_semantics<arbitrary>], iteration_bounds = array<i64: 2, 2>, scalar_prefetch = 0 : i64, scratch_operands = 1 : i64, tpu.core_type = #tpu.core_type<tc>, window_params = [{transform_indices = @transform_0, window_bounds = array<i64: 128, 1>}, {transform_indices = @transform_1, window_bounds = array<i64: 128, 1>}, {transform_indices = @transform_2, window_bounds = array<i64: 128, 128>}, {transform_indices = @transform_3, window_bounds = array<i64: 128, 64>}, {pipeline_mode = #tpu.pipeline_mode<synchronous>, transform_indices = @transform_4, window_bounds = array<i64: 64, 128>}, {pipeline_mode = #tpu.pipeline_mode<synchronous>, transform_indices = @transform_5, window_bounds = array<i64: 1, 128>}, {pipeline_mode = #tpu.pipeline_mode<synchronous>, transform_indices = @transform_6, window_bounds = array<i64: 128, 128>}, {pipeline_mode = #tpu.pipeline_mode<synchronous>, transform_indices = @transform_7, window_bounds = array<i64: 1, 128>}, {transform_indices = @transform_8, window_bounds = array<i64: 128, 128>}, {transform_indices = @transform_9, window_bounds = array<i64: 128, 128>}]} {
    %c0_i32 = arith.constant 0 : i32
    %0 = arith.cmpi eq, %arg1, %c0_i32 : i32
    %1 = arith.extui %0 : i1 to i32
    %c0_i32_0 = arith.constant 0 : i32
    %2 = arith.cmpi ne, %1, %c0_i32_0 : i32
    scf.if %2 {
      %cst_11 = arith.constant 0.000000e+00 : f32
      %16 = vector.broadcast %cst_11 : f32 to vector<128x64xf32>
      %c0_12 = arith.constant 0 : index
      %c0_13 = arith.constant 0 : index
      %17 = vector.load %arg12[%c0_12, %c0_13] : memref<128x64xf32, #tpu.memory_space<vmem>>, vector<128x64xf32>
      tpu.vector_store %arg12[%c0_12, %c0_13], %16 {strides = array<i32>} : memref<128x64xf32, #tpu.memory_space<vmem>>, vector<128x64xf32>,
    } else {
    }
    %c0 = arith.constant 0 : index
    %c0_1 = arith.constant 0 : index
    %3 = vector.load %arg3[%c0, %c0_1] : memref<128x1xf32, #tpu.memory_space<vmem>>, vector<128x1xf32>
    %c0_2 = arith.constant 0 : index
    %c0_3 = arith.constant 0 : index
    %4 = vector.load %arg5[%c0_2, %c0_3] : memref<128x64xf32, #tpu.memory_space<vmem>>, vector<128x64xf32>
    %5 = vector.broadcast %3 : vector<128x1xf32> to vector<128x64xf32>
    %6 = arith.mulf %5, %4 : vector<128x64xf32>
    %7 = arith.truncf %6 : vector<128x64xf32> to vector<128x64xbf16>
    %c0_4 = arith.constant 0 : index
    %c0_5 = arith.constant 0 : index
    %8 = vector.load %arg12[%c0_4, %c0_5] : memref<128x64xf32, #tpu.memory_space<vmem>>, vector<128x64xf32>
    %c0_6 = arith.constant 0 : index
    %c0_7 = arith.constant 0 : index
    %9 = vector.load %arg4[%c0_6, %c0_7] : memref<128x128xbf16, #tpu.memory_space<vmem>>, vector<128x128xbf16>
    %cst = arith.constant dense<0.000000e+00> : vector<128x64xf32>
    %10 = tpu.matmul %9, %7, %cst {dimension_numbers = #tpu.dot_dimension_numbers<[1], [0], [0], [1], [0, 0, 1, 1], [], []>} : vector<128x128xbf16>, vector<128x64xbf16>, vector<128x64xf32> -> vector<128x64xf32>
    %11 = arith.addf %8, %10 : vector<128x64xf32>
    %c0_8 = arith.constant 0 : index
    %c0_9 = arith.constant 0 : index
    %12 = vector.load %arg12[%c0_8, %c0_9] : memref<128x64xf32, #tpu.memory_space<vmem>>, vector<128x64xf32>
    tpu.vector_store %arg12[%c0_8, %c0_9], %11 {strides = array<i32>} : memref<128x64xf32, #tpu.memory_space<vmem>>, vector<128x64xf32>,
    %c1_i32 = arith.constant 1 : i32
    %13 = arith.cmpi eq, %arg1, %c1_i32 : i32
    %14 = arith.extui %13 : i1 to i32
    %c0_i32_10 = arith.constant 0 : i32
    %15 = arith.cmpi ne, %14, %c0_i32_10 : i32
    scf.if %15 {
      %c0_11 = arith.constant 0 : index
      %c0_12 = arith.constant 0 : index
      %16 = vector.load %arg2[%c0_11, %c0_12] : memref<128x1xf32, #tpu.memory_space<vmem>>, vector<128x1xf32>
      %c0_13 = arith.constant 0 : index
      %c0_14 = arith.constant 0 : index
      %17 = vector.load %arg12[%c0_13, %c0_14] : memref<128x64xf32, #tpu.memory_space<vmem>>, vector<128x64xf32>
      %18 = vector.broadcast %16 : vector<128x1xf32> to vector<128x64xf32>
      %19 = arith.mulf %18, %17 : vector<128x64xf32>
      %20 = arith.truncf %19 : vector<128x64xf32> to vector<128x64xbf16>
      %c0_15 = arith.constant 0 : index
      %c0_16 = arith.constant 0 : index
      %21 = vector.load %arg6[%c0_15, %c0_16] : memref<64x128xbf16, #tpu.memory_space<vmem>>, vector<64x128xbf16>
      %cst_17 = arith.constant dense<0.000000e+00> : vector<128x128xf32>
      %22 = tpu.matmul %20, %21, %cst_17 {dimension_numbers = #tpu.dot_dimension_numbers<[1], [0], [0], [1], [0, 0, 1, 1], [], []>} : vector<128x64xbf16>, vector<64x128xbf16>, vector<128x128xf32> -> vector<128x128xf32>
      %c0_18 = arith.constant 0 : index
      %c0_19 = arith.constant 0 : index
      %23 = vector.load %arg7[%c0_18, %c0_19] : memref<1x128xf32, #tpu.memory_space<vmem>>, vector<1x128xf32>
      %24 = vector.broadcast %23 : vector<1x128xf32> to vector<128x128xf32>
      %25 = arith.addf %22, %24 : vector<128x128xf32>
      %cst_20 = arith.constant 0.000000e+00 : f32
      %26 = vector.broadcast %cst_20 : f32 to vector<128x128xf32>
      %27 = arith.maximumf %25, %26 : vector<128x128xf32>
      %c0_21 = arith.constant 0 : index
      %c0_22 = arith.constant 0 : index
      %28 = vector.load %arg10[%c0_21, %c0_22] : memref<128x128xf32, #tpu.memory_space<vmem>>, vector<128x128xf32>
      tpu.vector_store %arg10[%c0_21, %c0_22], %27 {strides = array<i32>} : memref<128x128xf32, #tpu.memory_space<vmem>>, vector<128x128xf32>,
      %29 = arith.truncf %27 : vector<128x128xf32> to vector<128x128xbf16>
      %c0_23 = arith.constant 0 : index
      %c0_24 = arith.constant 0 : index
      %30 = vector.load %arg8[%c0_23, %c0_24] : memref<128x128xbf16, #tpu.memory_space<vmem>>, vector<128x128xbf16>
      %cst_25 = arith.constant dense<0.000000e+00> : vector<128x128xf32>
      %31 = tpu.matmul %29, %30, %cst_25 {dimension_numbers = #tpu.dot_dimension_numbers<[1], [0], [0], [1], [0, 0, 1, 1], [], []>} : vector<128x128xbf16>, vector<128x128xbf16>, vector<128x128xf32> -> vector<128x128xf32>
      %c0_26 = arith.constant 0 : index
      %c0_27 = arith.constant 0 : index
      %32 = vector.load %arg9[%c0_26, %c0_27] : memref<1x128xf32, #tpu.memory_space<vmem>>, vector<1x128xf32>
      %33 = vector.broadcast %32 : vector<1x128xf32> to vector<128x128xf32>
      %34 = arith.addf %31, %33 : vector<128x128xf32>
      %c0_28 = arith.constant 0 : index
      %c0_29 = arith.constant 0 : index
      %35 = vector.load %arg11[%c0_28, %c0_29] : memref<128x128xf32, #tpu.memory_space<vmem>>, vector<128x128xf32>
      tpu.vector_store %arg11[%c0_28, %c0_29], %34 {strides = array<i32>} : memref<128x128xf32, #tpu.memory_space<vmem>>, vector<128x128xf32>,
    } else {
    }
    return
  }
  func.func @transform_0(%arg0: i32, %arg1: i32) -> (i32, i32) {
    %c0_i32 = arith.constant 0 : i32
    %c0_i32_0 = arith.constant 0 : i32
    return %arg0, %c0_i32 : i32, i32
  }
  func.func @transform_1(%arg0: i32, %arg1: i32) -> (i32, i32) {
    %c0_i32 = arith.constant 0 : i32
    %c0_i32_0 = arith.constant 0 : i32
    return %arg1, %c0_i32 : i32, i32
  }
  func.func @transform_2(%arg0: i32, %arg1: i32) -> (i32, i32) {
    %c0_i32 = arith.constant 0 : i32
    return %arg0, %arg1 : i32, i32
  }
  func.func @transform_3(%arg0: i32, %arg1: i32) -> (i32, i32) {
    %c0_i32 = arith.constant 0 : i32
    %c0_i32_0 = arith.constant 0 : i32
    return %arg1, %c0_i32 : i32, i32
  }
  func.func @transform_4(%arg0: i32, %arg1: i32) -> (i32, i32) {
    %c0_i32 = arith.constant 0 : i32
    %c0_i32_0 = arith.constant 0 : i32
    %c0_i32_1 = arith.constant 0 : i32
    return %c0_i32, %c0_i32_0 : i32, i32
  }
  func.func @transform_5(%arg0: i32, %arg1: i32) -> (i32, i32) {
    %c0_i32 = arith.constant 0 : i32
    %c0_i32_0 = arith.constant 0 : i32
    %c0_i32_1 = arith.constant 0 : i32
    return %c0_i32, %c0_i32_0 : i32, i32
  }
  func.func @transform_6(%arg0: i32, %arg1: i32) -> (i32, i32) {
    %c0_i32 = arith.constant 0 : i32
    %c0_i32_0 = arith.constant 0 : i32
    %c0_i32_1 = arith.constant 0 : i32
    return %c0_i32, %c0_i32_0 : i32, i32
  }
  func.func @transform_7(%arg0: i32, %arg1: i32) -> (i32, i32) {
    %c0_i32 = arith.constant 0 : i32
    %c0_i32_0 = arith.constant 0 : i32
    %c0_i32_1 = arith.constant 0 : i32
    return %c0_i32, %c0_i32_0 : i32, i32
  }
  func.func @transform_8(%arg0: i32, %arg1: i32) -> (i32, i32) {
    %c0_i32 = arith.constant 0 : i32
    %c0_i32_0 = arith.constant 0 : i32
    return %arg0, %c0_i32 : i32, i32
  }
  func.func @transform_9(%arg0: i32, %arg1: i32) -> (i32, i32) {
    %c0_i32 = arith.constant 0 : i32
    %c0_i32_0 = arith.constant 0 : i32
    return %arg0, %c0_i32 : i32, i32
  }
}

</mosaic_0001>

<bundles_post_ra>
// kernel: tpu_custom_call.1
= control target key start
LH: loop header
LB: loop body
LE: loop exit
PB: predicated region body
PF: predicated region fallthrough
CT: control target
= control target key end

     0   :  { %s2598_s0 = inlined_call_operand.vmem [shape: f32[256,1], index: 0, kind: input, shape index: {}]   ;;  %s2599_s1 = inlined_call_operand.vmem [shape: f32[256,1], index: 1, kind: input, shape index: {}]   ;;  %s2600_s2 = inlined_call_operand.vmem [shape: bf16[256,256], index: 2, kind: input, shape index: {}]   ;;  %s2601_s3 = inlined_call_operand.vmem [shape: f32[256,64], index: 3, kind: input, shape index: {}]   ;;  %s2602_s4 = inlined_call_operand.vmem [shape: bf16[64,128], index: 4, kind: input, shape index: {}]   ;;  %s2603_s5 = inlined_call_operand.vmem [shape: f32[1,128], index: 5, kind: input, shape index: {}]   ;;  %s2604_s6 = inlined_call_operand.vmem [shape: bf16[128,128], index: 6, kind: input, shape index: {}]   ;;  %s2605_s7 = inlined_call_operand.vmem [shape: f32[1,128], index: 7, kind: input, shape index: {}]   ;;  %s2606_s8 = inlined_call_operand.hbm [shape: f32[256,128], index: 8, kind: output, shape index: {0}]   ;;  %s2607_s9 = inlined_call_operand.hbm [shape: f32[256,128], index: 9, kind: output, shape index: {1}]  }
   0x1   :  { %2617 = sst [smem:[#allocation20_spill]] %s2600_s2 }
   0x2   :  { %2618 = sst [smem:[#allocation21_spill]] %s2607_s9 }
   0x3   :  { %15 = vsyncpa [#allocation5], 0 }
   0x4   :  { %17 = vsyncpa [#allocation5 + $0x1], 0 }
   0x5   :  { %18 = vsyncpa [#allocation7], 0 }
   0x6   :  { %20 = vsyncpa [#allocation7 + $0x1], 0  ;;  %s2150_s30 = smov 0   ;;  %s2152_s10 = smov 0  }
   0x7   :  { %s2154_s11 = smov 0   ;;  %s2156_s12 = smov 0  }
   0x8   :  { %s2158_s13 = smov 0   ;;  %s2160_s14 = smov 0  }
   0x9   :  { %s2162_s15 = smov 0   ;;  %s2164_s16 = smov 0  }
   0xa   :  { %s2166_s17 = smov 0   ;;  %s2168_s18 = smov 0  }
   0xb LB: > { %2619 = sst [smem:[#allocation10_spill]] %s2055_s30  ;;  %s1607_s19 = sadd.s32 4294967295, %s2091_s18   ;;  %s2091_s18 = sphi %s2168_s18, %s26_s18   ;;  %s2087_s17 = sphi %s2166_s17, %s2644_s17   ;;  %s2083_s16 = sphi %s2164_s16, %s2643_s16   ;;  %s2079_s15 = sphi %s2162_s15, %s2642_s15   ;;  %s2075_s14 = sphi %s2160_s14, %s2641_s14   ;;  %s2071_s13 = sphi %s2158_s13, %s2640_s13   ;;  %s2067_s12 = sphi %s2156_s12, %s2639_s12   ;;  %s2063_s11 = sphi %s2154_s11, %s2638_s11   ;;  %s2059_s10 = sphi %s2152_s10, %s2646_s10   ;;  %s2055_s30 = sphi %s2150_s30, %s2645_s30  }
   0xc   : > { %2620 = sst [smem:[#allocation11_spill]] %s2063_s11  ;;  %s1608_s20 = sadd.s32 4294967294, %s2091_s18  }
   0xd   : > { %2621 = sst [smem:[#allocation12_spill]] %s2071_s13  ;;  %s35_s21 = sadd.s32 1, %s2083_s16 }
   0xe   : > { %2622 = sst [smem:[#allocation13_spill]] %s2083_s16  ;;  %s38_s22 = sadd.s32 1, %s2087_s17 }
   0xf   : > { %2623 = sst [smem:[#allocation14_spill]] %s2087_s17  ;;  %p36_p0 = scmp.ge.s32.totalorder %s35_s21, 2 }
  0x10   : > { %s99_s23 = sadd.s32 1, %s2071_s13  ;;  %p106_p1 = scmp.ne.s32.totalorder %s2071_s13, %s2067_s12 }
  0x11   : > { %p107_p2 = scmp.eq.s32.totalorder %s2091_s18, 0  ;;  %s2648_s21 = smov (%p36_p0, %s35_s21), 0 }
  0x12   : > { %2624 = sst [smem:[#allocation15_spill]] %s2648_s21  ;;  %s2650_s22 = smov (!%p36_p0, %s38_s22), %s2087_s17 }
  0x13   : > { %s95_s24 = ssub.s32 %s2083_s16, %s2648_s21  ;;  %p2213_p3 = por %p107_p2, %p106_p1 }
  0x14   : > { %p40_p4 = scmp.ge.s32.totalorder %s2650_s22, 2  ;;  %s235_s26 = sadd.s32 1, %s2063_s11 }
  0x15   : > { %p245_p5 = scmp.ne.s32.totalorder %s2063_s11, %s2059_s10  ;;  %p246_p6 = scmp.eq.s32.totalorder %s1607_s19, 3 }
  0x16   : > { %s2652_s22 = smov (%p40_p4, %s2650_s22), 0  ;;  %p251_p8 = scmp.ne.s32.totalorder %s2059_s10, %s2055_s30 }
  0x17   : > { %2626 = sst [smem:[#allocation16_spill]] %s2652_s22  ;;  %p2222_p7 = por %p246_p6, %p245_p5 }
  0x18   : > { %s94_s28 = ssub.s32 %s2087_s17, %s2652_s22  ;;  %p252_p9 = scmp.eq.s32.totalorder %s1608_s20, 3 }
  0x19   : > { %s96_s29 = sor.u32 %s95_s24, %s94_s28  ;;  %p233_p10 = scmp.eq.s32.totalorder %s94_s28, 0 }
  0x1a   : > { %p97_p11 = scmp.eq.s32.totalorder %s96_s29, 0  ;;  %p2230_p12 = por %p252_p9, %p251_p8 }
  0x1b   : > { %s2235_s9 = scalar_select %p233_p10, %s2063_s11, %s235_s26  }
  0x1c   : > { %s2628_s21 = scalar_select %p2230_p12, 1, 0 }
  0x1d   : > { %2630 = sst [smem:[#allocation18_spill]] %s2235_s9  ;;  %p1610_p13 = scmp.ge.s32.totalorder %s2091_s18, 4 }
  0x1e   : > { %2629 = sst [smem:[#allocation17_spill]] %s2628_s21 }
  0x1f   : > { %s2238_s19 = scalar_select %p97_p11, %s2071_s13, %s99_s23  }
  0x20   : > { %306 = sbr.rel (%p1610_p13) target bundleno = 57 (0x39), region = 32 }
  0x21   : > { %2631 = sst [smem:[#allocation19_spill]] %s2238_s19 }
  0x25   : > { %327 = sbr.rel (!%p2213_p3) target bundleno = 57 (0x39), region = 44  ;;  %s329_s20 = sand.u32 (%p2213_p3), 1, %s2071_s13  }
  0x26   : > { %s1665_s24 = sshll.u32 (%p2213_p3), %s2087_s17, 5  ;;  %s1611_s28 = sshll.u32 (%p2213_p3), %s329_s20, 6 }
  0x27   : > { %s334_s29 = sadd.s32 (%p2213_p3), %s2083_s16, %s1665_s24  ;;  %s2632_s2 = sld [smem:[#allocation20_spill]] (%p2213_p3) }
  0x28   : > { %s1614_s22 = sshll.u32 (%p2213_p3), %s334_s29, 2  ;;  %s331_s23 = scalar_lea.vmem (%p2213_p3), [#allocation3], %s1611_s28 }
  0x2d   : > { %s2249_s26 = scalar_lea.vmem %s2632_s2, %s1614_s22 }
  0x2e   : > { %v353_v0 = vld [vmem:[%s2249_s26] sm:$0xf]  ;;  %v355_v1 = vld [vmem:[%s2249_s26 + $0x8] sm:$0xf]  ;;  %v357_v2 = vld [vmem:[%s2249_s26 + $0x10] sm:$0xf] }
  0x2f   : > { %354 = vst [vmem:[%s331_s23] sm:$0xf] %v353_v0  ;;  %356 = vst [vmem:[%s331_s23 + $0x4] sm:$0xf] %v355_v1  ;;  %v359_v3 = vld [vmem:[%s2249_s26 + $0x18] sm:$0xf] }
  0x30   : > { %358 = vst [vmem:[%s331_s23 + $0x8] sm:$0xf] %v357_v2  ;;  %v361_v4 = vld [vmem:[%s2249_s26 + $0x20] sm:$0xf]  ;;  %v363_v5 = vld [vmem:[%s2249_s26 + $0x28] sm:$0xf] }
  0x31   : > { %360 = vst [vmem:[%s331_s23 + $0xc] sm:$0xf] %v359_v3  ;;  %362 = vst [vmem:[%s331_s23 + $0x10] sm:$0xf] %v361_v4  ;;  %v365_v6 = vld [vmem:[%s2249_s26 + $0x30] sm:$0xf] }
  0x32   : > { %364 = vst [vmem:[%s331_s23 + $0x14] sm:$0xf] %v363_v5  ;;  %v367_v7 = vld [vmem:[%s2249_s26 + $0x38] sm:$0xf]  ;;  %v369_v8 = vld [vmem:[%s2249_s26 + $0x40] sm:$0xf] }
  0x33   : > { %366 = vst [vmem:[%s331_s23 + $0x18] sm:$0xf] %v365_v6  ;;  %368 = vst [vmem:[%s331_s23 + $0x1c] sm:$0xf] %v367_v7  ;;  %v371_v9 = vld [vmem:[%s2249_s26 + $0x48] sm:$0xf] }
  0x34   : > { %370 = vst [vmem:[%s331_s23 + $0x20] sm:$0xf] %v369_v8  ;;  %v373_v10 = vld [vmem:[%s2249_s26 + $0x50] sm:$0xf]  ;;  %v375_v11 = vld [vmem:[%s2249_s26 + $0x58] sm:$0xf] }
  0x35   : > { %372 = vst [vmem:[%s331_s23 + $0x24] sm:$0xf] %v371_v9  ;;  %374 = vst [vmem:[%s331_s23 + $0x28] sm:$0xf] %v373_v10  ;;  %v377_v12 = vld [vmem:[%s2249_s26 + $0x60] sm:$0xf] }
  0x36   : > { %376 = vst [vmem:[%s331_s23 + $0x2c] sm:$0xf] %v375_v11  ;;  %v379_v13 = vld [vmem:[%s2249_s26 + $0x68] sm:$0xf]  ;;  %v381_v14 = vld [vmem:[%s2249_s26 + $0x70] sm:$0xf] }
  0x37   : > { %378 = vst [vmem:[%s331_s23 + $0x30] sm:$0xf] %v377_v12  ;;  %380 = vst [vmem:[%s331_s23 + $0x34] sm:$0xf] %v379_v13  ;;  %v383_v15 = vld [vmem:[%s2249_s26 + $0x78] sm:$0xf] }
  0x38   : > { %382 = vst [vmem:[%s331_s23 + $0x38] sm:$0xf] %v381_v14  ;;  %384 = vst [vmem:[%s331_s23 + $0x3c] sm:$0xf] %v383_v15 }
  0x39 PF: > { %p1615_p0 = scmp.ge.s32.totalorder %s2091_s18, 1  ;;  %p448_p1 = scmp.lt.s32.totalorder %s2091_s18, 5 }
  0x3b   : > { %p449_p2 = pnand %p1615_p0, %p448_p1 }
  0x3c   : > { %s455_s30 = sand.u32 (!%p449_p2), 1, %s2067_s12   ;;  %s2271_s21 = sand.u32 (!%p449_p2), 1, %s2059_s10  }
  0x3d   : > { %452 = sbr.rel (%p449_p2) target bundleno = 1074 (0x432), region = 89  ;;  %s1616_s22 = sshll.u32 (!%p449_p2), %s455_s30, 6 }
  0x3e   : > { %s1617_s25 = sshll.u32 (!%p449_p2), %s2271_s21, 7  ;;  %s1619_s20 = sshll.u32 (!%p449_p2), %s2079_s15, 4 }
  0x3f   : > { %p511_p3 = scmp.lt.s32.totalorder (!%p449_p2), %s1619_s20, 31  ;;  %s1621_s24 = sshll.u32 (!%p449_p2), %s2075_s14, 4 }
  0x40   : > { %p517_p4 = scmp.lt.s32.totalorder (!%p449_p2), %s1621_s24, 31  ;;  %s2291_s9 = scalar_lea.vmem (!%p449_p2), [#allocation3], %s1616_s22 }
  0x41   : > { %s2293_s11 = scalar_lea.vmem (!%p449_p2), [#allocation4], %s1617_s25  ;;  %p1625_p5 = scmp.ne.s32.totalorder (!%p449_p2), %s2075_s14, 0 }
  0x42   : > { %s2654_s20 = smov (!%p511_p3, %s1619_s20), 31  ;;  %s2656_s24 = smov (!%p517_p4, %s1621_s24), 31 }
  0x43   : > { %s1620_s28 = sshll.u32 %s2654_s20, 3  ;;  %s1622_s2 = sshll.u32 %s2656_s24, 3 }
  0x44   : > { %s2279_s23 = scalar_lea.vmem %s2598_s0, %s1620_s28  ;;  %s2284_s16 = scalar_lea.vmem %s2599_s1, %s1622_s2 }
  0x45   : > { %s2289_s13 = scalar_lea.vmem %s2601_s3, %s1622_s2  ;;  %s2295_s20 = scalar_lea.vmem [#allocation6], %s1617_s25 }
  0x46   : > { %535 = sbr.rel (%p1625_p5) target bundleno = 84 (0x54), region = 97 }
  0x4b   : > { %vm536_vm0 = vcmask 523264   ;;  %v2093_v16 = vmov 0.0  }
  0x4c   : > { %537 = vst.msk [vmem:[#allocation2] sm:$0xff] %vm536_vm0, %v2093_v16  ;;  %538 = vst.msk [vmem:[#allocation2 + $0x8] sm:$0xff] %vm536_vm0, %v2093_v16 }
  0x4d   : > { %539 = vst.msk [vmem:[#allocation2 + $0x10] sm:$0xff] %vm536_vm0, %v2093_v16  ;;  %540 = vst.msk [vmem:[#allocation2 + $0x18] sm:$0xff] %vm536_vm0, %v2093_v16 }
  0x4e   : > { %541 = vst.msk [vmem:[#allocation2 + $0x20] sm:$0xff] %vm536_vm0, %v2093_v16  ;;  %542 = vst.msk [vmem:[#allocation2 + $0x28] sm:$0xff] %vm536_vm0, %v2093_v16 }
  0x4f   : > { %543 = vst.msk [vmem:[#allocation2 + $0x30] sm:$0xff] %vm536_vm0, %v2093_v16  ;;  %544 = vst.msk [vmem:[#allocation2 + $0x38] sm:$0xff] %vm536_vm0, %v2093_v16 }
  0x50   : > { %545 = vst.msk [vmem:[#allocation2 + $0x40] sm:$0xff] %vm536_vm0, %v2093_v16  ;;  %546 = vst.msk [vmem:[#allocation2 + $0x48] sm:$0xff] %vm536_vm0, %v2093_v16 }
  0x51   : > { %547 = vst.msk [vmem:[#allocation2 + $0x50] sm:$0xff] %vm536_vm0, %v2093_v16  ;;  %548 = vst.msk [vmem:[#allocation2 + $0x58] sm:$0xff] %vm536_vm0, %v2093_v16 }
  0x52   : > { %549 = vst.msk [vmem:[#allocation2 + $0x60] sm:$0xff] %vm536_vm0, %v2093_v16  ;;  %550 = vst.msk [vmem:[#allocation2 + $0x68] sm:$0xff] %vm536_vm0, %v2093_v16 }
  0x53   : > { %551 = vst.msk [vmem:[#allocation2 + $0x70] sm:$0xff] %vm536_vm0, %v2093_v16  ;;  %552 = vst.msk [vmem:[#allocation2 + $0x78] sm:$0xff] %vm536_vm0, %v2093_v16 }
  0x54 PF: > { %v567_v17 = vld [vmem:[%s2284_s16 + $0x70] sm:$0xff]  ;;  %v565_v18 = vld [vmem:[%s2284_s16 + $0x60] sm:$0xff]  ;;  %v2094_v19 = vmov 0   ;;  %v568_v20 = vld [vmem:[%s2284_s16 + $0x78] sm:$0xff]  ;;  %vm882_vm1 = vcmask 523264   ;;  %p1634_p6 = scmp.ne.s32.totalorder %s2075_s14, 1 }
  0x55   : > { %1930 = vset.pattern.permute.xlu1 %v2094_v19  ;;  %1929 = vset.pattern.permute.xlu0 %v2094_v19  ;;  %v566_v21 = vld [vmem:[%s2284_s16 + $0x68] sm:$0xff]  ;;  %v564_v22 = vld [vmem:[%s2284_s16 + $0x58] sm:$0xff]  ;;  %v563_v23 = vld [vmem:[%s2284_s16 + $0x50] sm:$0xff] }
  0x56   : > { %657 = vperm.xlu0 %1929, %v567_v17   ;;  %647 = vperm.xlu1 %1930, %v565_v18   ;;  %v562_v24 = vld [vmem:[%s2284_s16 + $0x48] sm:$0xff]  ;;  %v561_v25 = vld [vmem:[%s2284_s16 + $0x40] sm:$0xff]  ;;  %v560_v26 = vld [vmem:[%s2284_s16 + $0x38] sm:$0xff] }
  0x57   : > { %v559_v27 = vld [vmem:[%s2284_s16 + $0x30] sm:$0xff]  ;;  %v558_v28 = vld [vmem:[%s2284_s16 + $0x28] sm:$0xff]  ;;  %v557_v29 = vld [vmem:[%s2284_s16 + $0x20] sm:$0xff] }
  0x58   : > { %v556_v30 = vld [vmem:[%s2284_s16 + $0x18] sm:$0xff]  ;;  %v555_v31 = vld [vmem:[%s2284_s16 + $0x10] sm:$0xff]  ;;  %v554_v32 = vld [vmem:[%s2284_s16 + $0x8] sm:$0xff] }
  0x59   : > { %v553_v33 = vld [vmem:[%s2284_s16] sm:$0xff]  ;;  %v583_v38 = vld [vmem:[%s2289_s13 + $0x70] sm:$0xff]  ;;  %v584_v40 = vld [vmem:[%s2289_s13 + $0x78] sm:$0xff] }
  0x5a   : > { %662 = vperm.xlu0 %1929, %v568_v20   ;;  %652 = vperm.xlu1 %1930, %v566_v21   ;;  %v1931_v34 = vld [vmem:[%s2291_s9] sm:$0xff]   ;;  %v582_v41 = vld [vmem:[%s2289_s13 + $0x68] sm:$0xff]  ;;  %v580_v48 = vld [vmem:[%s2289_s13 + $0x58] sm:$0xff] }
  0x5b   : > { %v1932_v35 = vld [vmem:[%s2291_s9 + $0x20] sm:$0xff]   ;;  %1728 = vmatprep.mubr.bf16.mxu0 %v1931_v34  ;;  %v579_v49 = vld [vmem:[%s2289_s13 + $0x50] sm:$0xff]  ;;  %v578_v56 = vld [vmem:[%s2289_s13 + $0x48] sm:$0xff] }
  0x5c   : > { %1736 = vmatprep.mubr.bf16.mxu1 %v1932_v35  ;;  %v581_v39 = vld [vmem:[%s2289_s13 + $0x60] sm:$0xff]  ;;  %v576_v63 = vld [vmem:[%s2289_s13 + $0x38] sm:$0xff]  ;;  %v575_v0 = vld [vmem:[%s2289_s13 + $0x30] sm:$0xff] }
  0x5d   : > { %v577_v57 = vld [vmem:[%s2289_s13 + $0x40] sm:$0xff]  ;;  %v574_v6 = vld [vmem:[%s2289_s13 + $0x28] sm:$0xff]  ;;  %v572_v13 = vld [vmem:[%s2289_s13 + $0x18] sm:$0xff] }
  0x5e   : > { %642 = vperm.xlu1 %1930, %v564_v22   ;;  %637 = vperm.xlu0 %1929, %v563_v23   ;;  %v573_v7 = vld [vmem:[%s2289_s13 + $0x20] sm:$0xff]  ;;  %v571_v14 = vld [vmem:[%s2289_s13 + $0x10] sm:$0xff]  ;;  %v570_v20 = vld [vmem:[%s2289_s13 + $0x8] sm:$0xff] }
  0x5f   : > { %v569_v21 = vld [vmem:[%s2289_s13] sm:$0xff]  ;;  %v691_v34 = vld [vmem:[#allocation2 + $0x10] sm:$0xff] }
  0x60   : > { %v699_v35 = vld [vmem:[#allocation2 + $0x50] sm:$0xff] }
  0x62   : > { %632 = vperm.xlu1 %1930, %v562_v24   ;;  %627 = vperm.xlu0 %1929, %v561_v25  }
  0x66   : > { %622 = vperm.xlu1 %1930, %v560_v26   ;;  %617 = vperm.xlu0 %1929, %v559_v27  }
  0x6a   : > { %612 = vperm.xlu1 %1930, %v558_v28   ;;  %607 = vperm.xlu0 %1929, %v557_v29   ;;  %v1933_v28 = vld [vmem:[%s2291_s9 + $0x8] sm:$0xff]  }
  0x6b   : > { %v1934_v29 = vld [vmem:[%s2291_s9 + $0x28] sm:$0xff]  }
  0x6e   : > { %602 = vperm.xlu1 %1930, %v556_v30   ;;  %597 = vperm.xlu0 %1929, %v555_v31   ;;  %v1935_v30 = vld [vmem:[%s2291_s9 + $0x10] sm:$0xff]  }
  0x6f   : > { %v1936_v31 = vld [vmem:[%s2291_s9 + $0x30] sm:$0xff]  }
  0x72   : > { %592 = vperm.xlu1 %1930, %v554_v32   ;;  %587 = vperm.xlu0 %1929, %v553_v33   ;;  %v1937_v32 = vld [vmem:[%s2291_s9 + $0x18] sm:$0xff]  }
  0x73   : > { %v1938_v33 = vld [vmem:[%s2291_s9 + $0x38] sm:$0xff]  }
  0xd1   : > { %v658_v36 = vpop.permute.xlu0 %657  ;;  %v648_v37 = vpop.permute.xlu1 %647 }
  0xd2   : > { %v679_v44 = vmul.f32 %v658_v36, %v583_v38  ;;  %v677_v45 = vmul.f32 %v648_v37, %v581_v39  ;;  %v689_v38 = vld [vmem:[#allocation2] sm:$0xff] }
  0xd3   : > { %v697_v39 = vld [vmem:[#allocation2 + $0x40] sm:$0xff] }
  0xd5   : > { %v663_v42 = vpop.permute.xlu0 %662  ;;  %v653_v43 = vpop.permute.xlu1 %652 }
  0xd6   : > { %v680_v46 = vmul.f32 %v663_v42, %v584_v40  ;;  %v678_v47 = vmul.f32 %v653_v43, %v582_v41 }
  0xd8   : > { %v688_v50 = vpack.c.bf16 %v680_v46, %v679_v44  ;;  %v687_v53 = vpack.c.bf16 %v678_v47, %v677_v45  ;;  %v692_v44 = vld [vmem:[#allocation2 + $0x18] sm:$0xff] }
  0xd9   : > { %v643_v51 = vpop.permute.xlu1 %642  ;;  %v638_v52 = vpop.permute.xlu0 %637  ;;  %v700_v45 = vld [vmem:[#allocation2 + $0x58] sm:$0xff] }
  0xda   : > { %v676_v54 = vmul.f32 %v643_v51, %v580_v48  ;;  %v675_v55 = vmul.f32 %v638_v52, %v579_v49  ;;  %1712 = vmatprep.subr.bf16.mxu0 %v688_v50  ;;  %1800 = vmatprep.subr.bf16.mxu1 %v688_v50  ;;  %v698_v51 = vld [vmem:[#allocation2 + $0x48] sm:$0xff] }
  0xdb   : > { %1713 = vmatpush3.bf16.msra.mxu0 %v688_v50  ;;  %1808 = vmatpush3.bf16.msra.mxu1 %v688_v50  ;;  %v690_v50 = vld [vmem:[#allocation2 + $0x8] sm:$0xff] }
  0xdc   : > { %1714 = vmatprep.subr.bf16.mxu0 %v687_v53  ;;  %1801 = vmatprep.subr.bf16.mxu1 %v687_v53  ;;  %v686_v60 = vpack.c.bf16 %v676_v54, %v675_v55 }
  0xdd   : > { %v633_v58 = vpop.permute.xlu1 %632  ;;  %v628_v59 = vpop.permute.xlu0 %627 }
  0xde   : > { %v674_v61 = vmul.f32 %v633_v58, %v578_v56  ;;  %v673_v62 = vmul.f32 %v628_v59, %v577_v57  ;;  %v695_v56 = vld [vmem:[#allocation2 + $0x30] sm:$0xff] }
  0xdf   : > { %1715 = vmatpush3.bf16.msra.mxu0 %v687_v53  ;;  %1809 = vmatpush3.bf16.msra.mxu1 %v687_v53  ;;  %v703_v57 = vld [vmem:[#allocation2 + $0x70] sm:$0xff] }
  0xe0   : > { %1716 = vmatprep.subr.bf16.mxu0 %v686_v60  ;;  %1802 = vmatprep.subr.bf16.mxu1 %v686_v60  ;;  %v685_v3 = vpack.c.bf16 %v674_v61, %v673_v62  ;;  %v693_v62 = vld [vmem:[#allocation2 + $0x20] sm:$0xff] }
  0xe1   : > { %v623_v1 = vpop.permute.xlu1 %622  ;;  %v618_v2 = vpop.permute.xlu0 %617 }
  0xe2   : > { %v672_v4 = vmul.f32 %v623_v1, %v576_v63  ;;  %v671_v5 = vmul.f32 %v618_v2, %v575_v0  ;;  %v701_v63 = vld [vmem:[#allocation2 + $0x60] sm:$0xff] }
  0xe3   : > { %1717 = vmatpush3.bf16.msra.mxu0 %v686_v60  ;;  %1810 = vmatpush3.bf16.msra.mxu1 %v686_v60 }
  0xe4   : > { %1718 = vmatprep.subr.bf16.mxu0 %v685_v3  ;;  %1803 = vmatprep.subr.bf16.mxu1 %v685_v3  ;;  %v684_v10 = vpack.c.bf16 %v672_v4, %v671_v5  ;;  %v696_v4 = vld [vmem:[#allocation2 + $0x38] sm:$0xff] }
  0xe5   : > { %v613_v8 = vpop.permute.xlu1 %612  ;;  %v608_v9 = vpop.permute.xlu0 %607  ;;  %v704_v5 = vld [vmem:[#allocation2 + $0x78] sm:$0xff] }
  0xe6   : > { %v670_v11 = vmul.f32 %v613_v8, %v574_v6  ;;  %v669_v12 = vmul.f32 %v608_v9, %v573_v7 }
  0xe7   : > { %1719 = vmatpush3.bf16.msra.mxu0 %v685_v3  ;;  %1811 = vmatpush3.bf16.msra.mxu1 %v685_v3 }
  0xe8   : > { %1720 = vmatprep.subr.bf16.mxu0 %v684_v10  ;;  %1804 = vmatprep.subr.bf16.mxu1 %v684_v10  ;;  %v683_v17 = vpack.c.bf16 %v670_v11, %v669_v12  ;;  %v702_v11 = vld [vmem:[#allocation2 + $0x68] sm:$0xff] }
  0xe9   : > { %v603_v15 = vpop.permute.xlu1 %602  ;;  %v598_v16 = vpop.permute.xlu0 %597 }
  0xea   : > { %v668_v18 = vmul.f32 %v603_v15, %v572_v13  ;;  %v667_v19 = vmul.f32 %v598_v16, %v571_v14 }
  0xeb   : > { %1721 = vmatpush3.bf16.msra.mxu0 %v684_v10  ;;  %1812 = vmatpush3.bf16.msra.mxu1 %v684_v10  ;;  %v694_v10 = vld [vmem:[#allocation2 + $0x28] sm:$0xff] }
  0xec   : > { %1722 = vmatprep.subr.bf16.mxu0 %v683_v17  ;;  %1805 = vmatprep.subr.bf16.mxu1 %v683_v17  ;;  %v682_v24 = vpack.c.bf16 %v668_v18, %v667_v19 }
  0xed   : > { %v593_v22 = vpop.permute.xlu1 %592  ;;  %v588_v23 = vpop.permute.xlu0 %587 }
  0xee   : > { %v666_v25 = vmul.f32 %v593_v22, %v570_v20  ;;  %v665_v26 = vmul.f32 %v588_v23, %v569_v21 }
  0xef   : > { %1723 = vmatpush3.bf16.msra.mxu0 %v683_v17  ;;  %1813 = vmatpush3.bf16.msra.mxu1 %v683_v17 }
  0xf0   : > { %1724 = vmatprep.subr.bf16.mxu0 %v682_v24  ;;  %1806 = vmatprep.subr.bf16.mxu1 %v682_v24  ;;  %v681_v27 = vpack.c.bf16 %v666_v25, %v665_v26 }
  0xf3   : > { %1725 = vmatpush3.bf16.msra.mxu0 %v682_v24  ;;  %1814 = vmatpush3.bf16.msra.mxu1 %v682_v24 }
  0xf4   : > { %1726 = vmatprep.subr.bf16.mxu0 %v681_v27  ;;  %1807 = vmatprep.subr.bf16.mxu1 %v681_v27 }
  0xf7   : > { %1727 = vmatpush3.bf16.msra.mxu0 %v681_v27  ;;  %1815 = vmatpush3.bf16.msra.mxu1 %v681_v27 }
  0xfa   : > { %1729 = vmatmul.mubr.bf16.vlgmr.msra.gmra.mxu0 %v1933_v28  ;;  %1737 = vmatmul.mubr.bf16.vlgmr.msra.gmra.mxu1 %v1934_v29 }
  0xfb   : > { %1732 = vmatprep.mubr.bf16.mxu0 %v1935_v30  ;;  %1740 = vmatprep.mubr.bf16.mxu1 %v1936_v31 }
 0x102   : > { %1733 = vmatmul.mubr.bf16.gmra.mxu0 %v1937_v32  ;;  %1741 = vmatmul.mubr.bf16.gmra.mxu1 %v1938_v33 }
 0x1ba   : > { %v1730_v36 = vpop.f32.mrf.mxu0  ;;  %v1738_v37 = vpop.f32.mrf.mxu1 }
 0x1bb   : > { %v868_v40 = vadd.f32 %v1730_v36, %v691_v34  ;;  %v876_v41 = vadd.f32 %v1738_v37, %v699_v35 }
 0x1bc   : > { %v803_v42 = vpop.f32.mrf.mxu0  ;;  %v835_v43 = vpop.f32.mrf.mxu1 }
 0x1bd   : > { %885 = vst.msk [vmem:[#allocation2 + $0x10] sm:$0xff] %vm882_vm1, %v868_v40  ;;  %893 = vst.msk [vmem:[#allocation2 + $0x50] sm:$0xff] %vm882_vm1, %v876_v41  ;;  %v866_v46 = vadd.f32 %v803_v42, %v689_v38  ;;  %v874_v47 = vadd.f32 %v835_v43, %v697_v39 }
 0x1be   : > { %v1731_v48 = vpop.f32.mrf.mxu0  ;;  %v1739_v49 = vpop.f32.mrf.mxu1 }
 0x1bf   : > { %883 = vst.msk [vmem:[#allocation2] sm:$0xff] %vm882_vm1, %v866_v46  ;;  %891 = vst.msk [vmem:[#allocation2 + $0x40] sm:$0xff] %vm882_vm1, %v874_v47  ;;  %v869_v52 = vadd.f32 %v1731_v48, %v692_v44  ;;  %v877_v53 = vadd.f32 %v1739_v49, %v700_v45 }
 0x1c0   : > { %v806_v54 = vpop.f32.mrf.mxu0  ;;  %v838_v55 = vpop.f32.mrf.mxu1 }
 0x1c1   : > { %886 = vst.msk [vmem:[#allocation2 + $0x18] sm:$0xff] %vm882_vm1, %v869_v52  ;;  %894 = vst.msk [vmem:[#allocation2 + $0x58] sm:$0xff] %vm882_vm1, %v877_v53  ;;  %v867_v58 = vadd.f32 %v806_v54, %v690_v50  ;;  %v875_v59 = vadd.f32 %v838_v55, %v698_v51 }
 0x1c2   : > { %v1734_v60 = vpop.f32.mrf.mxu0  ;;  %v1742_v61 = vpop.f32.mrf.mxu1 }
 0x1c3   : > { %884 = vst.msk [vmem:[#allocation2 + $0x8] sm:$0xff] %vm882_vm1, %v867_v58  ;;  %892 = vst.msk [vmem:[#allocation2 + $0x48] sm:$0xff] %vm882_vm1, %v875_v59  ;;  %v872_v0 = vadd.f32 %v1734_v60, %v695_v56  ;;  %v880_v1 = vadd.f32 %v1742_v61, %v703_v57 }
 0x1c4   : > { %v819_v2 = vpop.f32.mrf.mxu0  ;;  %v851_v3 = vpop.f32.mrf.mxu1 }
 0x1c5   : > { %889 = vst.msk [vmem:[#allocation2 + $0x30] sm:$0xff] %vm882_vm1, %v872_v0  ;;  %897 = vst.msk [vmem:[#allocation2 + $0x70] sm:$0xff] %vm882_vm1, %v880_v1  ;;  %v870_v6 = vadd.f32 %v819_v2, %v693_v62  ;;  %v878_v7 = vadd.f32 %v851_v3, %v701_v63 }
 0x1c6   : > { %v1735_v8 = vpop.f32.mrf.mxu0  ;;  %v1743_v9 = vpop.f32.mrf.mxu1 }
 0x1c7   : > { %887 = vst.msk [vmem:[#allocation2 + $0x20] sm:$0xff] %vm882_vm1, %v870_v6  ;;  %895 = vst.msk [vmem:[#allocation2 + $0x60] sm:$0xff] %vm882_vm1, %v878_v7  ;;  %v873_v12 = vadd.f32 %v1735_v8, %v696_v4  ;;  %v881_v13 = vadd.f32 %v1743_v9, %v704_v5  ;;  %902 = sbr.rel (%p1634_p6) target bundleno = 1027 (0x403), region = 101 }
 0x1c8   : > { %v822_v14 = vpop.f32.mrf.mxu0  ;;  %v854_v15 = vpop.f32.mrf.mxu1 }
 0x1c9   : > { %890 = vst.msk [vmem:[#allocation2 + $0x38] sm:$0xff] %vm882_vm1, %v873_v12  ;;  %898 = vst.msk [vmem:[#allocation2 + $0x78] sm:$0xff] %vm882_vm1, %v881_v13  ;;  %v871_v16 = vadd.f32 %v822_v14, %v694_v10  ;;  %v879_v17 = vadd.f32 %v854_v15, %v702_v11 }
 0x1cb   : > { %888 = vst.msk [vmem:[#allocation2 + $0x28] sm:$0xff] %vm882_vm1, %v871_v16  ;;  %896 = vst.msk [vmem:[#allocation2 + $0x68] sm:$0xff] %vm882_vm1, %v879_v17 }
 0x1cc   : > { %v905_v18 = vld [vmem:[%s2279_s23 + $0x10] sm:$0xff]  ;;  %v903_v19 = vld [vmem:[%s2279_s23] sm:$0xff]  ;;  %v2095_v20 = vmov 0   ;;  %v906_v21 = vld [vmem:[%s2279_s23 + $0x18] sm:$0xff] }
 0x1cd   : > { %1940 = vset.pattern.permute.xlu1 %v2095_v20  ;;  %1939 = vset.pattern.permute.xlu0 %v2095_v20  ;;  %v904_v22 = vld [vmem:[%s2279_s23 + $0x8] sm:$0xff]  ;;  %v1941_v23 = vld [vmem:[%s2602_s4 + $0x18] sm:$0xff]   ;;  %v907_v25 = vld [vmem:[%s2279_s23 + $0x20] sm:$0xff] }
 0x1ce   : > { %947 = vperm.xlu1 %1940, %v905_v18   ;;  %937 = vperm.xlu0 %1939, %v903_v19   ;;  %v908_v24 = vld [vmem:[%s2279_s23 + $0x28] sm:$0xff]  ;;  %v1942_v26 = vld [vmem:[%s2602_s4 + $0x10] sm:$0xff]   ;;  %v910_v27 = vld [vmem:[%s2279_s23 + $0x38] sm:$0xff] }
 0x1cf   : > { %1744 = vmatprep.subr.bf16.mxu0 %v1941_v23  ;;  %v909_v28 = vld [vmem:[%s2279_s23 + $0x30] sm:$0xff]  ;;  %v1943_v29 = vld [vmem:[%s2602_s4 + $0x8] sm:$0xff]   ;;  %v911_v31 = vld [vmem:[%s2279_s23 + $0x40] sm:$0xff] }
 0x1d0   : > { %1745 = vmatpush3.bf16.msra.mxu0 %v1941_v23  ;;  %v912_v30 = vld [vmem:[%s2279_s23 + $0x48] sm:$0xff]  ;;  %v1944_v32 = vld [vmem:[%s2602_s4] sm:$0xff]   ;;  %v914_v33 = vld [vmem:[%s2279_s23 + $0x58] sm:$0xff] }
 0x1d1   : > { %1746 = vmatprep.subr.bf16.mxu0 %v1942_v26  ;;  %v913_v34 = vld [vmem:[%s2279_s23 + $0x50] sm:$0xff]  ;;  %v916_v35 = vld [vmem:[%s2279_s23 + $0x68] sm:$0xff]  ;;  %v915_v36 = vld [vmem:[%s2279_s23 + $0x60] sm:$0xff] }
 0x1d2   : > { %952 = vperm.xlu1 %1940, %v906_v21   ;;  %942 = vperm.xlu0 %1939, %v904_v22   ;;  %v918_v37 = vld [vmem:[%s2279_s23 + $0x78] sm:$0xff]  ;;  %v917_v38 = vld [vmem:[%s2279_s23 + $0x70] sm:$0xff]  ;;  %v1947_v41 = vld [vmem:[%s2604_s6 + $0x28] sm:$0xff]  }
 0x1d3   : > { %v1945_v39 = vld [vmem:[%s2604_s6 + $0x38] sm:$0xff]   ;;  %v1946_v40 = vld [vmem:[%s2604_s6 + $0x30] sm:$0xff]   ;;  %v1948_v42 = vld [vmem:[%s2604_s6 + $0x20] sm:$0xff]  }
 0x1d4   : > { %1747 = vmatpush3.bf16.msra.mxu0 %v1942_v26  ;;  %1816 = vmatprep.subr.bf16.mxu1 %v1945_v39  ;;  %v2414_v43 = vld [vmem:[%s2604_s6 + $0x18] sm:$0xff]   ;;  %v921_v46 = vld [vmem:[#allocation2 + $0x10] sm:$0xff]  ;;  %v919_v47 = vld [vmem:[#allocation2] sm:$0xff] }
 0x1d5   : > { %1748 = vmatprep.subr.bf16.mxu0 %v1943_v29  ;;  %1824 = vmatpush3.bf16.msra.mxu1 %v1945_v39  ;;  %v922_v48 = vld [vmem:[#allocation2 + $0x18] sm:$0xff]  ;;  %v920_v49 = vld [vmem:[#allocation2 + $0x8] sm:$0xff]  ;;  %v923_v57 = vld [vmem:[#allocation2 + $0x20] sm:$0xff] }
 0x1d6   : > { %962 = vperm.xlu1 %1940, %v908_v24   ;;  %957 = vperm.xlu0 %1939, %v907_v25   ;;  %v924_v56 = vld [vmem:[#allocation2 + $0x28] sm:$0xff]  ;;  %v926_v0 = vld [vmem:[#allocation2 + $0x38] sm:$0xff]  ;;  %v925_v1 = vld [vmem:[#allocation2 + $0x30] sm:$0xff] }
 0x1d7   : > { %1817 = vmatprep.subr.bf16.mxu1 %v1946_v40  ;;  %v928_v7 = vld [vmem:[#allocation2 + $0x48] sm:$0xff]  ;;  %v927_v8 = vld [vmem:[#allocation2 + $0x40] sm:$0xff]  ;;  %v930_v14 = vld [vmem:[#allocation2 + $0x58] sm:$0xff] }
 0x1d8   : > { %1749 = vmatpush3.bf16.msra.mxu0 %v1943_v29  ;;  %v929_v15 = vld [vmem:[#allocation2 + $0x50] sm:$0xff]  ;;  %v932_v21 = vld [vmem:[#allocation2 + $0x68] sm:$0xff]  ;;  %v931_v22 = vld [vmem:[#allocation2 + $0x60] sm:$0xff] }
 0x1d9   : > { %1750 = vmatprep.subr.bf16.mxu0 %v1944_v32  ;;  %1825 = vmatpush3.bf16.msra.mxu1 %v1946_v40  ;;  %v933_v29 = vld [vmem:[#allocation2 + $0x70] sm:$0xff] }
 0x1da   : > { %972 = vperm.xlu1 %1940, %v910_v27   ;;  %967 = vperm.xlu0 %1939, %v909_v28   ;;  %v934_v28 = vld [vmem:[#allocation2 + $0x78] sm:$0xff] }
 0x1db   : > { %1818 = vmatprep.subr.bf16.mxu1 %v1947_v41 }
 0x1dc   : > { %1751 = vmatpush3.bf16.msra.mxu0 %v1944_v32 }
 0x1dd   : > { %1768 = vmatprep.subr.bf16.mxu0 %v1945_v39  ;;  %1826 = vmatpush3.bf16.msra.mxu1 %v1947_v41 }
 0x1de   : > { %982 = vperm.xlu1 %1940, %v912_v30   ;;  %977 = vperm.xlu0 %1939, %v911_v31  }
 0x1df   : > { %1819 = vmatprep.subr.bf16.mxu1 %v1948_v42 }
 0x1e1   : > { %1827 = vmatpush3.bf16.msra.mxu1 %v1948_v42 }
 0x1e2   : > { %992 = vperm.xlu1 %1940, %v914_v33   ;;  %987 = vperm.xlu0 %1939, %v913_v34  }
 0x1e3   : > { %1820 = vmatprep.subr.bf16.mxu1 %v2414_v43 }
 0x1e5   : > { %1828 = vmatpush3.bf16.msra.mxu1 %v2414_v43 }
 0x1e6   : > { %1002 = vperm.xlu1 %1940, %v916_v35   ;;  %997 = vperm.xlu0 %1939, %v915_v36   ;;  %v1950_v36 = vld [vmem:[%s2604_s6 + $0x10] sm:$0xff]  }
 0x1e7   : > { %1821 = vmatprep.subr.bf16.mxu1 %v1950_v36 }
 0x1e9   : > { %1829 = vmatpush3.bf16.msra.mxu1 %v1950_v36 }
 0x1ea   : > { %1012 = vperm.xlu1 %1940, %v918_v37   ;;  %1007 = vperm.xlu0 %1939, %v917_v38   ;;  %v1951_v37 = vld [vmem:[%s2604_s6 + $0x8] sm:$0xff]   ;;  %v1952_v38 = vld [vmem:[%s2604_s6] sm:$0xff]  }
 0x1eb   : > { %1822 = vmatprep.subr.bf16.mxu1 %v1951_v37 }
 0x1ed   : > { %1830 = vmatpush3.bf16.msra.mxu1 %v1951_v37 }
 0x1ee   : > { %1823 = vmatprep.subr.bf16.mxu1 %v1952_v38 }
 0x1f1   : > { %1831 = vmatpush3.bf16.msra.mxu1 %v1952_v38 }
 0x249   : > { %v948_v44 = vpop.permute.xlu1 %947  ;;  %v938_v45 = vpop.permute.xlu0 %937 }
 0x24a   : > { %v1017_v52 = vmul.f32 %v948_v44, %v921_v46  ;;  %v1015_v53 = vmul.f32 %v938_v45, %v919_v47 }
 0x24d   : > { %v953_v50 = vpop.permute.xlu1 %952  ;;  %v943_v51 = vpop.permute.xlu0 %942 }
 0x24e   : > { %v1018_v54 = vmul.f32 %v953_v50, %v922_v48  ;;  %v1016_v55 = vmul.f32 %v943_v51, %v920_v49 }
 0x250   : > { %v1032_v58 = vpack.c.bf16 %v1018_v54, %v1017_v52  ;;  %v1031_v59 = vpack.c.bf16 %v1016_v55, %v1015_v53 }
 0x251   : > { %v963_v60 = vpop.permute.xlu1 %962  ;;  %v958_v61 = vpop.permute.xlu0 %957 }
 0x252   : > { %v1020_v62 = vmul.f32 %v963_v60, %v924_v56  ;;  %v1019_v63 = vmul.f32 %v958_v61, %v923_v57  ;;  %1752 = vmatprep.mubr.msk.bf16.mxu0 %vm882_vm1, %v1031_v59 }
 0x253   : > { %1753 = vmatmul.mubr.msk.bf16.vlgmr.msra.gmra.mxu0 %vm882_vm1, %v1032_v58 }
 0x254   : > { %v1033_v2 = vpack.c.bf16 %v1020_v62, %v1019_v63  ;;  %1769 = vmatpush3.bf16.msra.mxu0 %v1945_v39  ;;  %v2440_v39 = vld [vmem:[%s2603_s5] ss:$0 sm:$0xff] }
 0x255   : > { %v973_v3 = vpop.permute.xlu1 %972  ;;  %v968_v4 = vpop.permute.xlu0 %967  ;;  %1770 = vmatprep.subr.bf16.mxu0 %v1946_v40 }
 0x256   : > { %v1022_v5 = vmul.f32 %v973_v3, %v926_v0  ;;  %v1021_v6 = vmul.f32 %v968_v4, %v925_v1  ;;  %1756 = vmatprep.mubr.msk.bf16.mxu0 %vm882_vm1, %v1033_v2 }
 0x258   : > { %v1034_v9 = vpack.c.bf16 %v1022_v5, %v1021_v6  ;;  %1771 = vmatpush3.bf16.msra.mxu0 %v1946_v40 }
 0x259   : > { %v983_v10 = vpop.permute.xlu1 %982  ;;  %v978_v11 = vpop.permute.xlu0 %977  ;;  %1772 = vmatprep.subr.bf16.mxu0 %v1947_v41 }
 0x25a   : > { %v1024_v12 = vmul.f32 %v983_v10, %v928_v7  ;;  %v1023_v13 = vmul.f32 %v978_v11, %v927_v8 }
 0x25b   : > { %1757 = vmatmul.mubr.msk.bf16.gmra.mxu0 %vm882_vm1, %v1034_v9 }
 0x25c   : > { %v1035_v16 = vpack.c.bf16 %v1024_v12, %v1023_v13  ;;  %1773 = vmatpush3.bf16.msra.mxu0 %v1947_v41 }
 0x25d   : > { %v993_v17 = vpop.permute.xlu1 %992  ;;  %v988_v18 = vpop.permute.xlu0 %987  ;;  %1774 = vmatprep.subr.bf16.mxu0 %v1948_v42 }
 0x25e   : > { %v1026_v19 = vmul.f32 %v993_v17, %v930_v14  ;;  %v1025_v20 = vmul.f32 %v988_v18, %v929_v15  ;;  %1760 = vmatprep.mubr.msk.bf16.mxu0 %vm882_vm1, %v1035_v16 }
 0x260   : > { %v1036_v23 = vpack.c.bf16 %v1026_v19, %v1025_v20  ;;  %1775 = vmatpush3.bf16.msra.mxu0 %v1948_v42 }
 0x261   : > { %v1003_v24 = vpop.permute.xlu1 %1002  ;;  %v998_v25 = vpop.permute.xlu0 %997  ;;  %1776 = vmatprep.subr.bf16.mxu0 %v2414_v43 }
 0x262   : > { %v1028_v26 = vmul.f32 %v1003_v24, %v932_v21  ;;  %v1027_v27 = vmul.f32 %v998_v25, %v931_v22 }
 0x263   : > { %1761 = vmatmul.mubr.msk.bf16.gmra.mxu0 %vm882_vm1, %v1036_v23 }
 0x264   : > { %v1037_v30 = vpack.c.bf16 %v1028_v26, %v1027_v27  ;;  %1777 = vmatpush3.bf16.msra.mxu0 %v2414_v43 }
 0x265   : > { %v1013_v31 = vpop.permute.xlu1 %1012  ;;  %v1008_v32 = vpop.permute.xlu0 %1007  ;;  %1778 = vmatprep.subr.bf16.mxu0 %v1950_v36 }
 0x266   : > { %v1030_v33 = vmul.f32 %v1013_v31, %v934_v28  ;;  %v1029_v34 = vmul.f32 %v1008_v32, %v933_v29  ;;  %1764 = vmatprep.mubr.msk.bf16.mxu0 %vm882_vm1, %v1037_v30  ;;  %v1648_v32 = vld [vmem:[%s2605_s7] ss:$0 sm:$0xff] }
 0x268   : > { %v1038_v35 = vpack.c.bf16 %v1030_v33, %v1029_v34  ;;  %1779 = vmatpush3.bf16.msra.mxu0 %v1950_v36 }
 0x269   : > { %1780 = vmatprep.subr.bf16.mxu0 %v1951_v37 }
 0x26b   : > { %1765 = vmatmul.mubr.msk.bf16.gmra.mxu0 %vm882_vm1, %v1038_v35 }
 0x26c   : > { %1781 = vmatpush3.bf16.msra.mxu0 %v1951_v37 }
 0x26d   : > { %1782 = vmatprep.subr.bf16.mxu0 %v1952_v38 }
 0x270   : > { %1783 = vmatpush3.bf16.msra.mxu0 %v1952_v38 }
 0x313   : > { %v1754_v40 = vpop.f32.mrf.mxu0 }
 0x314   : > { %v1145_v41 = vadd.f32 %v1754_v40, %v2440_v39 }
 0x315   : > { %v1136_v42 = vpop.f32.mrf.mxu0 }
 0x316   : > { %v1201_v43 = vmax.f32 %v1145_v41, 0.0  ;;  %v1137_v44 = vadd.f32 %v2440_v39, %v1136_v42 }
 0x317   : > { %v1755_v45 = vpop.f32.mrf.mxu0 }
 0x318   : > { %1217 = vst [vmem:[%s2293_s11 + $0x10] sm:$0xff] %v1201_v43  ;;  %v1199_v46 = vmax.f32 %v1137_v44, 0.0  ;;  %v1148_v47 = vadd.f32 %v1755_v45, %v2440_v39 }
 0x319   : > { %v1139_v48 = vpop.f32.mrf.mxu0 }
 0x31a   : > { %1215 = vst [vmem:[%s2293_s11] sm:$0xff] %v1199_v46  ;;  %v1202_v49 = vmax.f32 %v1148_v47, 0.0  ;;  %v1140_v50 = vadd.f32 %v2440_v39, %v1139_v48 }
 0x31b   : > { %v1758_v51 = vpop.f32.mrf.mxu0 }
 0x31c   : > { %1218 = vst [vmem:[%s2293_s11 + $0x18] sm:$0xff] %v1202_v49  ;;  %v1200_v52 = vmax.f32 %v1140_v50, 0.0  ;;  %v1161_v53 = vadd.f32 %v1758_v51, %v2440_v39  ;;  %v1232_v58 = vpack.c.bf16 %v1202_v49, %v1201_v43 }
 0x31d   : > { %v1152_v54 = vpop.f32.mrf.mxu0 }
 0x31e   : > { %1216 = vst [vmem:[%s2293_s11 + $0x8] sm:$0xff] %v1200_v52  ;;  %v1231_v55 = vpack.c.bf16 %v1200_v52, %v1199_v46  ;;  %v1205_v56 = vmax.f32 %v1161_v53, 0.0  ;;  %v1153_v57 = vadd.f32 %v2440_v39, %v1152_v54 }
 0x31f   : > { %v1759_v59 = vpop.f32.mrf.mxu0 }
 0x320   : > { %1221 = vst [vmem:[%s2293_s11 + $0x30] sm:$0xff] %v1205_v56  ;;  %v1203_v60 = vmax.f32 %v1153_v57, 0.0  ;;  %v1164_v61 = vadd.f32 %v1759_v59, %v2440_v39  ;;  %1784 = vmatprep.mubr.bf16.mxu0 %v1231_v55 }
 0x321   : > { %v1155_v62 = vpop.f32.mrf.mxu0  ;;  %1785 = vmatmul.mubr.bf16.vlgmr.msra.gmra.mxu0 %v1232_v58 }
 0x322   : > { %1219 = vst [vmem:[%s2293_s11 + $0x20] sm:$0xff] %v1203_v60  ;;  %v1206_v63 = vmax.f32 %v1164_v61, 0.0  ;;  %v1156_v0 = vadd.f32 %v2440_v39, %v1155_v62 }
 0x323   : > { %v1762_v1 = vpop.f32.mrf.mxu0 }
 0x324   : > { %1222 = vst [vmem:[%s2293_s11 + $0x38] sm:$0xff] %v1206_v63  ;;  %v1204_v2 = vmax.f32 %v1156_v0, 0.0  ;;  %v1177_v3 = vadd.f32 %v1762_v1, %v2440_v39  ;;  %v1234_v8 = vpack.c.bf16 %v1206_v63, %v1205_v56 }
 0x325   : > { %v1168_v4 = vpop.f32.mrf.mxu0 }
 0x326   : > { %1220 = vst [vmem:[%s2293_s11 + $0x28] sm:$0xff] %v1204_v2  ;;  %v1209_v5 = vmax.f32 %v1177_v3, 0.0  ;;  %v1169_v6 = vadd.f32 %v2440_v39, %v1168_v4  ;;  %v1233_v7 = vpack.c.bf16 %v1204_v2, %v1203_v60 }
 0x327   : > { %v1763_v9 = vpop.f32.mrf.mxu0 }
 0x328   : > { %1225 = vst [vmem:[%s2293_s11 + $0x50] sm:$0xff] %v1209_v5  ;;  %v1207_v10 = vmax.f32 %v1169_v6, 0.0  ;;  %v1180_v11 = vadd.f32 %v1763_v9, %v2440_v39  ;;  %1788 = vmatprep.mubr.bf16.mxu1 %v1233_v7 }
 0x329   : > { %v1171_v12 = vpop.f32.mrf.mxu0  ;;  %1789 = vmatmul.mubr.bf16.vlgmr.msra.gmra.mxu1 %v1234_v8 }
 0x32a   : > { %1223 = vst [vmem:[%s2293_s11 + $0x40] sm:$0xff] %v1207_v10  ;;  %v1210_v13 = vmax.f32 %v1180_v11, 0.0  ;;  %v1172_v14 = vadd.f32 %v2440_v39, %v1171_v12 }
 0x32b   : > { %v1766_v15 = vpop.f32.mrf.mxu0 }
 0x32c   : > { %1226 = vst [vmem:[%s2293_s11 + $0x58] sm:$0xff] %v1210_v13  ;;  %v1208_v16 = vmax.f32 %v1172_v14, 0.0  ;;  %v1193_v17 = vadd.f32 %v1766_v15, %v2440_v39  ;;  %v1236_v22 = vpack.c.bf16 %v1210_v13, %v1209_v5 }
 0x32d   : > { %v1184_v18 = vpop.f32.mrf.mxu0 }
 0x32e   : > { %1224 = vst [vmem:[%s2293_s11 + $0x48] sm:$0xff] %v1208_v16  ;;  %v1235_v19 = vpack.c.bf16 %v1208_v16, %v1207_v10  ;;  %v1213_v20 = vmax.f32 %v1193_v17, 0.0  ;;  %v1185_v21 = vadd.f32 %v2440_v39, %v1184_v18 }
 0x32f   : > { %v1767_v23 = vpop.f32.mrf.mxu0 }
 0x330   : > { %1229 = vst [vmem:[%s2293_s11 + $0x70] sm:$0xff] %v1213_v20  ;;  %v1211_v24 = vmax.f32 %v1185_v21, 0.0  ;;  %v1196_v25 = vadd.f32 %v1767_v23, %v2440_v39  ;;  %1792 = vmatprep.mubr.bf16.mxu1 %v1235_v19 }
 0x331   : > { %v1187_v26 = vpop.f32.mrf.mxu0  ;;  %1793 = vmatmul.mubr.bf16.gmra.mxu1 %v1236_v22 }
 0x332   : > { %1227 = vst [vmem:[%s2293_s11 + $0x60] sm:$0xff] %v1211_v24  ;;  %v1214_v27 = vmax.f32 %v1196_v25, 0.0  ;;  %v1188_v28 = vadd.f32 %v2440_v39, %v1187_v26 }
 0x334   : > { %1230 = vst [vmem:[%s2293_s11 + $0x78] sm:$0xff] %v1214_v27  ;;  %v1212_v29 = vmax.f32 %v1188_v28, 0.0  ;;  %v1238_v31 = vpack.c.bf16 %v1214_v27, %v1213_v20 }
 0x336   : > { %1228 = vst [vmem:[%s2293_s11 + $0x68] sm:$0xff] %v1212_v29  ;;  %v1237_v30 = vpack.c.bf16 %v1212_v29, %v1211_v24 }
 0x338   : > { %1796 = vmatprep.mubr.bf16.mxu1 %v1237_v30 }
 0x339   : > { %1797 = vmatmul.mubr.bf16.gmra.mxu1 %v1238_v31 }
 0x3e1   : > { %v1786_v33 = vpop.f32.mrf.mxu0 }
 0x3e2   : > { %v1353_v34 = vadd.f32 %v1786_v33, %v1648_v32 }
 0x3e3   : > { %v1344_v35 = vpop.f32.mrf.mxu0 }
 0x3e4   : > { %1409 = vst [vmem:[%s2295_s20 + $0x10] sm:$0xff] %v1353_v34  ;;  %v1345_v36 = vadd.f32 %v1648_v32, %v1344_v35 }
 0x3e5   : > { %v1787_v37 = vpop.f32.mrf.mxu0 }
 0x3e6   : > { %1407 = vst [vmem:[%s2295_s20] sm:$0xff] %v1345_v36  ;;  %v1356_v38 = vadd.f32 %v1787_v37, %v1648_v32 }
 0x3e7   : > { %v1347_v39 = vpop.f32.mrf.mxu0 }
 0x3e8   : > { %1410 = vst [vmem:[%s2295_s20 + $0x18] sm:$0xff] %v1356_v38  ;;  %v1348_v40 = vadd.f32 %v1648_v32, %v1347_v39 }
 0x3e9   : > { %v1790_v41 = vpop.f32.mrf.mxu1 }
 0x3ea   : > { %1408 = vst [vmem:[%s2295_s20 + $0x8] sm:$0xff] %v1348_v40  ;;  %v1369_v42 = vadd.f32 %v1790_v41, %v1648_v32 }
 0x3eb   : > { %v1360_v43 = vpop.f32.mrf.mxu1 }
 0x3ec   : > { %1413 = vst [vmem:[%s2295_s20 + $0x30] sm:$0xff] %v1369_v42  ;;  %v1361_v44 = vadd.f32 %v1648_v32, %v1360_v43 }
 0x3ed   : > { %v1791_v45 = vpop.f32.mrf.mxu1 }
 0x3ee   : > { %1411 = vst [vmem:[%s2295_s20 + $0x20] sm:$0xff] %v1361_v44  ;;  %v1372_v46 = vadd.f32 %v1791_v45, %v1648_v32 }
 0x3ef   : > { %v1363_v47 = vpop.f32.mrf.mxu1 }
 0x3f0   : > { %1414 = vst [vmem:[%s2295_s20 + $0x38] sm:$0xff] %v1372_v46  ;;  %v1364_v48 = vadd.f32 %v1648_v32, %v1363_v47 }
 0x3f1   : > { %v1794_v49 = vpop.f32.mrf.mxu1 }
 0x3f2   : > { %1412 = vst [vmem:[%s2295_s20 + $0x28] sm:$0xff] %v1364_v48  ;;  %v1385_v50 = vadd.f32 %v1794_v49, %v1648_v32 }
 0x3f3   : > { %v1376_v51 = vpop.f32.mrf.mxu1 }
 0x3f4   : > { %1417 = vst [vmem:[%s2295_s20 + $0x50] sm:$0xff] %v1385_v50  ;;  %v1377_v52 = vadd.f32 %v1648_v32, %v1376_v51 }
 0x3f5   : > { %v1795_v53 = vpop.f32.mrf.mxu1 }
 0x3f6   : > { %1415 = vst [vmem:[%s2295_s20 + $0x40] sm:$0xff] %v1377_v52  ;;  %v1388_v54 = vadd.f32 %v1795_v53, %v1648_v32 }
 0x3f7   : > { %v1379_v55 = vpop.f32.mrf.mxu1 }
 0x3f8   : > { %1418 = vst [vmem:[%s2295_s20 + $0x58] sm:$0xff] %v1388_v54  ;;  %v1380_v56 = vadd.f32 %v1648_v32, %v1379_v55 }
 0x3f9   : > { %v1798_v57 = vpop.f32.mrf.mxu1 }
 0x3fa   : > { %1416 = vst [vmem:[%s2295_s20 + $0x48] sm:$0xff] %v1380_v56  ;;  %v1401_v58 = vadd.f32 %v1798_v57, %v1648_v32 }
 0x3fb   : > { %v1392_v59 = vpop.f32.mrf.mxu1 }
 0x3fc   : > { %1421 = vst [vmem:[%s2295_s20 + $0x70] sm:$0xff] %v1401_v58  ;;  %v1393_v60 = vadd.f32 %v1648_v32, %v1392_v59 }
 0x3fd   : > { %v1799_v61 = vpop.f32.mrf.mxu1 }
 0x3fe   : > { %1419 = vst [vmem:[%s2295_s20 + $0x60] sm:$0xff] %v1393_v60  ;;  %v1404_v62 = vadd.f32 %v1799_v61, %v1648_v32 }
 0x3ff   : > { %v1395_v63 = vpop.f32.mrf.mxu1 }
 0x400   : > { %1422 = vst [vmem:[%s2295_s20 + $0x78] sm:$0xff] %v1404_v62  ;;  %v1396_v0 = vadd.f32 %v1648_v32, %v1395_v63 }
 0x402   : > { %1420 = vst [vmem:[%s2295_s20 + $0x68] sm:$0xff] %v1396_v0 }
 0x403 PF: > { %s1666_s26 = sshll.u32 %s2079_s15, 11  ;;  %s1442_s2 = sshll.u32 %s2293_s11, 4  ;;  %s2502_s2 = int_to_ptr.vmem [resolvable:$true] %s1442_s2 }
 0x404   : > { %s2499_s30 = scalar_lea.hbm %s2606_s8, %s1666_s26  ;;  %s1424_s9 = scalar_lea.sflag [#allocation5], %s2271_s21 }
 0x405   : > { %s1953_s13 = scalar_lea.vmem %s2502_s2, 2048  ;;  %s2096_s14 = smov [#allocation4]  }
 0x406   : > { %p1954_p8 = scmp.ne.s32.totalorder %s2502_s2, %s1953_s13  ;;  %s1957_s16 = sshll.u32 %s2096_s14, 4  ;;  %s1958_s16 = int_to_ptr.vmem [resolvable:$false] %s1957_s16 }
 0x407   : > { %s1959_s17 = scalar_lea.vmem %s1958_s16, 4096  ;;  %p1960_p11 = scmp.lt.s32.totalorder %s2502_s2, %s1958_s16 }
 0x408   : > { %p1955_p9 = pnand %p1954_p8, %p2222_p7  ;;  %p1961_p13 = scmp.lt.s32.totalorder %s1959_s17, %s1953_s13 }
 0x40a   : > { %p1956_p10 = pneg %p1955_p9  ;;  %p1962_p0 = por %p1961_p13, %p1960_p11 }
 0x40c   : > { %p1963_p1 = pnand %p1962_p0, %p1956_p10 }
 0x40e   : > { %1966 = shalt.err (!%p1963_p1)
}
 0x40f   : > { %s1967_s11 = scalar_lea.hbm %s2499_s30, 2048  ;;  %s1971_s25 = scalar_lea.hbm %s2606_s8, 4096 }
 0x410   : > { %p1968_p2 = scmp.ne.s32.totalorder %s2499_s30, %s1967_s11  ;;  %p1972_p5 = scmp.lt.s32.totalorder %s2499_s30, %s2606_s8 }
 0x411   : > { %p1973_p6 = scmp.lt.s32.totalorder %s1971_s25, %s1967_s11 }
 0x412   : > { %p1969_p3 = pnand %p1968_p2, %p2222_p7 }
 0x413   : > { %p1974_p8 = por %p1973_p6, %p1972_p5 }
 0x414   : > { %p1970_p4 = pneg %p1969_p3 }
 0x416   : > { %p1975_p9 = pnand %p1974_p8, %p1970_p4 }
 0x418   : > { %1978 = shalt.err (!%p1975_p9)
}
 0x419   : > { %s2097_s29 = smov 128   ;;  %s2098_s12 = smov 8  }
 0x41a   : > { %1832 = dma.vmem_to_hbm [thread:$0]  (%p2222_p7), %s2502_s2, 2048, %s2499_s30, %s1424_s9, %s2097_s29, %s2097_s29, %s2098_s12  }
 0x41b   : > { %s2633_s14 = sld [smem:[#allocation21_spill]]  ;;  %s1458_s17 = sshll.u32 %s2295_s20, 4  ;;  %s2538_s17 = int_to_ptr.vmem [resolvable:$true] %s1458_s17 }
 0x41c   : > { %s1429_s11 = scalar_lea.sflag [#allocation7], %s2271_s21  ;;  %s1979_s22 = scalar_lea.vmem %s2538_s17, 2048 }
 0x41d   : > { %p1980_p10 = scmp.ne.s32.totalorder %s2538_s17, %s1979_s22  ;;  %s2099_s25 = smov [#allocation6]  }
 0x41e   : > { %s1983_s30 = sshll.u32 %s2099_s25, 4  ;;  %s1984_s30 = int_to_ptr.vmem [resolvable:$false] %s1983_s30 }
 0x41f   : > { %p1981_p11 = pnand %p1980_p10, %p2222_p7  ;;  %s1985_s15 = scalar_lea.vmem %s1984_s30, 4096 }
 0x420   : > { %p1986_p0 = scmp.lt.s32.totalorder %s2538_s17, %s1984_s30  ;;  %p1987_p1 = scmp.lt.s32.totalorder %s1985_s15, %s1979_s22 }
 0x421   : > { %s2634_s19 = smov %s2633_s14  ;;  %s2535_s16 = scalar_lea.hbm %s2633_s14, %s1666_s26 }
 0x422   : > { %p1982_p13 = pneg %p1981_p11  ;;  %p1988_p2 = por %p1987_p1, %p1986_p0 }
 0x424   : > { %p1989_p3 = pnand %p1988_p2, %p1982_p13 }
 0x426   : > { %1992 = shalt.err (!%p1989_p3)
}
 0x427   : > { %s1993_s20 = scalar_lea.hbm %s2535_s16, 2048  ;;  %s1997_s2 = scalar_lea.hbm %s2634_s19, 4096 }
 0x428   : > { %p1994_p4 = scmp.ne.s32.totalorder %s2535_s16, %s1993_s20  ;;  %p1998_p8 = scmp.lt.s32.totalorder %s2535_s16, %s2634_s19 }
 0x429   : > { %p1999_p9 = scmp.lt.s32.totalorder %s1997_s2, %s1993_s20 }
 0x42a   : > { %p1995_p5 = pnand %p1994_p4, %p2222_p7 }
 0x42b   : > { %p2000_p10 = por %p1999_p9, %p1998_p8 }
 0x42c   : > { %p1996_p6 = pneg %p1995_p5 }
 0x42e   : > { %p2001_p11 = pnand %p2000_p10, %p1996_p6 }
 0x430   : > { %2004 = shalt.err (!%p2001_p11)
}
 0x431   : > { %1833 = dma.vmem_to_hbm [thread:$0]  (%p2222_p7), %s2538_s17, 2048, %s2535_s16, %s1429_s11, %s2097_s29, %s2097_s29, %s2098_s12  }
 0x432 PF: > { %s2635_s28 = sld [smem:[#allocation10_spill]]  ;;  %p1843_p13 = scmp.ge.s32.totalorder %s2091_s18, 2 }
 0x434   : > { %p1837_p0 = pnand %p1843_p13, %p2230_p12 }
 0x436   : > { %p1838_p1 = pneg %p1837_p0 }
 0x438   : > { %s1473_s13 = sand.u32 1, %s2635_s28  }
 0x439   : > { %s1474_s14 = scalar_lea.sflag [#allocation5], %s1473_s13 }
 0x43a   : > { %2046 = dma.done.wait (%p1838_p1), %s1474_s14, 2048  }
 0x43b   : > { %2048 = vsyncadd (%p1838_p1), %s1474_s14, 4294965248  ;;  %s1483_s22 = scalar_lea.sflag [#allocation7], %s1473_s13 }
 0x43c   : > { %2050 = dma.done.wait (%p1838_p1), %s1483_s22, 2048  }
 0x43d   : > { %2052 = vsyncadd (%p1838_p1), %s1483_s22, 4294965248  ;;  %s26_s18 = sadd.s32 1, %s2091_s18   ;;  %s2637_s27 = sld [smem:[#allocation11_spill]] }
 0x43e   : > { %p23_p2 = scmp.ge.s32.totalorder %s26_s18, 6   ;;  %s2638_s11 = sld [smem:[#allocation18_spill]] }
 0x43f   : > { %s2639_s12 = sld [smem:[#allocation12_spill]]  ;;  %s2645_s30 = smov %s2059_s10 }
 0x440   : > { %s2640_s13 = sld [smem:[#allocation19_spill]]  ;;  %25 = sbr.rel (!%p23_p2) target bundleno = 11 (0xb), region = 167 }
 0x441   : > { %s2641_s14 = sld [smem:[#allocation13_spill]] }
 0x442   : > { %s2642_s15 = sld [smem:[#allocation14_spill]] }
 0x443   : > { %s2643_s16 = sld [smem:[#allocation15_spill]]  ;;  %s2646_s10 = smov %s2637_s27 }
 0x444   : > { %s2644_s17 = sld [smem:[#allocation16_spill]] }
 0x445   :  { %1488 = vsyncpa [#allocation5], 1 }
 0x446   :  { %1490 = vsyncpa [#allocation5 + $0x1], 1 }
 0x447   :  { %1491 = vsyncpa [#allocation7], 1 }
 0x448   :  { %1493 = vsyncpa [#allocation7 + $0x1], 1 }

</bundles_post_ra>
